<compile_context>
chip_gen: v7x
topology: tpu7x:2x2x1
jax: 0.10.0
libtpu: 0.0.40
codegen_flags: <defaults>
</compile_context>

<pallas_src>
import jax
import jax.numpy as jnp
from jax import lax
from jax.experimental import pallas as pl
from jax.experimental.pallas import tpu as pltpu

# ----------------------------- sizes -----------------------------
N = 8        # nodes per graph
E = 16       # edges per graph
FX = 32      # node feature dim
FE = 16      # edge feature dim
FU = 8       # global feature dim
FE_OUT = 32  # edge model output dim
FX_OUT = 32  # node model output dim
FU_OUT = 16  # global model output dim
LANE = 128   # lane-dense output width (unmasked vst)

# ------------------ packed parameter slab layout (rows) ------------------
# Every group starts on an 8-row boundary so slab slices are sublane-aligned.
_EDGE_W0 = 0
_EDGE_WL = 2 * FX + FE + FU          # 88: [We_src; We_dst; We_e; We_u]
_EDGE_B0 = _EDGE_W0 + _EDGE_WL       # 88: be
_NODE_W0 = 96
_NODE_WL = FX + LANE + FU            # 168: [Wn_x; Wn_agg(K->128); Wn_u]
_NODE_B0 = _NODE_W0 + _NODE_WL       # 264: bn
_GLOB_W0 = 272
_GLOB_WL = FU + LANE                 # 136: [Wg_u; Wg_x(K->128)]
_GLOB_B0 = _GLOB_W0 + _GLOB_WL       # 408: bg
K_SLAB = 416


# ----------------------------- fused kernel -----------------------------
def meta_kernel(w_ref, idx_ref, x_ref, e_ref, u_ref,
                e_out_ref, x_out_ref, u_out_ref):
    n_nodes = x_ref.shape[0]
    n_edges = e_ref.shape[0]

    x = x_ref[...]                       # (N, FX)
    e = e_ref[...]                       # (E, FE)
    u = u_ref[...]                       # (1, FU)
    idx = idx_ref[...]                   # (E, 2) int32: [row | col]

    # One-hot gather masks built in-kernel (VPU compares; exact on the MXU).
    row_s = idx[:, 0:1]                  # (E, 1)
    col_s = idx[:, 1:2]                  # (E, 1)
    node_iota = lax.broadcasted_iota(jnp.int32, (n_edges, n_nodes), 1)
    g_row = (node_iota == row_s).astype(jnp.float32)       # (E, N)
    g_col = (node_iota == col_s).astype(jnp.float32)       # (E, N)

    # ------------- edge model: ReLU(Lin([x[row], x[col], e, u])) -------------
    x_src = jnp.dot(g_row, x, preferred_element_type=jnp.float32)   # (E, FX)
    x_dst = jnp.dot(g_col, x, preferred_element_type=jnp.float32)   # (E, FX)
    u_e = jnp.broadcast_to(u, (n_edges, u.shape[1]))                 # (E, FU)
    edge_in = jnp.concatenate([x_src, x_dst, e, u_e], axis=1)        # (E, 88)
    acc_e = jnp.dot(edge_in, w_ref[_EDGE_W0:_EDGE_W0 + _EDGE_WL, :],
                    preferred_element_type=jnp.float32)
    acc_e = acc_e + w_ref[_EDGE_B0:_EDGE_B0 + 1, :]
    e_new = jnp.maximum(acc_e, 0.0)                                  # (E, 128)
    e_out_ref[...] = e_new                                           # full-lane store

    # -------- node model: ReLU(Lin([x, scatter_mean(e_new, col), u])) --------
    # Reuse g_col (transposed contraction) instead of rebuilding an (N, E) mask.
    tn = (((0,), (0,)), ((), ()))
    agg_sum = lax.dot_general(g_col, e_new, tn,
                              preferred_element_type=jnp.float32)    # (N, 128)
    deg = lax.dot_general(g_col, jnp.ones((n_edges, 1), jnp.float32), tn,
                          preferred_element_type=jnp.float32)        # (N, 1)
    agg = agg_sum * pl.reciprocal(jnp.maximum(deg, 1.0), approx=True)
    u_n = jnp.broadcast_to(u, (n_nodes, u.shape[1]))                 # (N, FU)
    node_in = jnp.concatenate([x, agg, u_n], axis=1)                 # (N, 168)
    acc_n = jnp.dot(node_in, w_ref[_NODE_W0:_NODE_W0 + _NODE_WL, :],
                    preferred_element_type=jnp.float32)
    acc_n = acc_n + w_ref[_NODE_B0:_NODE_B0 + 1, :]
    x_new = jnp.maximum(acc_n, 0.0)                                  # (N, 128)
    x_out_ref[...] = x_new                                           # full-lane store

    # ---------------- global model: ReLU(Lin([u, mean(x_new)])) --------------
    x_mean = jnp.mean(x_new, axis=0, keepdims=True)                  # (1, 128)
    glob_in = jnp.concatenate([u, x_mean], axis=1)                   # (1, 136)
    acc_u = jnp.dot(glob_in, w_ref[_GLOB_W0:_GLOB_W0 + _GLOB_WL, :],
                    preferred_element_type=jnp.float32)
    acc_u = acc_u + w_ref[_GLOB_B0:_GLOB_B0 + 1, :]
    u_out_ref[...] = jnp.maximum(acc_u, 0.0)                         # (1, 128)


# ----------------------------- parameter packing -----------------------------
def pack_params(params):
    """One-time prep: pack every weight/bias into a single (K_SLAB, 128) slab.

    All padding is exactly zero, so padded lanes of every output stay exactly 0
    (ReLU(0) == 0 propagates through the node/global models)."""
    def lane_pad(w):
        return jnp.pad(w, ((0, 0), (0, LANE - w.shape[1])))

    def k_pad(w, k):
        return jnp.pad(w, ((0, k - w.shape[0]), (0, 0)))

    gap = lambda n: jnp.zeros((n, LANE), jnp.float32)
    pieces = [
        lane_pad(params["We_src"]),                    # rows   0: 32
        lane_pad(params["We_dst"]),                    # rows  32: 64
        lane_pad(params["We_e"]),                      # rows  64: 80
        lane_pad(params["We_u"]),                      # rows  80: 88
        lane_pad(params["be"]),                        # row   88
        gap(_NODE_W0 - (_EDGE_B0 + 1)),                # align to 96
        lane_pad(params["Wn_x"]),                      # rows  96:128
        k_pad(lane_pad(params["Wn_agg"]), LANE),       # rows 128:256 (K 32->128)
        lane_pad(params["Wn_u"]),                      # rows 256:264
        lane_pad(params["bn"]),                        # row  264
        gap(_GLOB_W0 - (_NODE_B0 + 1)),                # align to 272
        lane_pad(params["Wg_u"]),                      # rows 272:280
        k_pad(lane_pad(params["Wg_x"]), LANE),         # rows 280:408 (K 32->128)
        lane_pad(params["bg"]),                        # row  408
        gap(K_SLAB - (_GLOB_B0 + 1)),                  # pad to 416
    ]
    slab = jnp.concatenate(pieces, axis=0)
    assert slab.shape == (K_SLAB, LANE)
    return slab


# ----------------------------- wrapper -----------------------------
@jax.jit
def meta_layer_forward(x, edge_index, edge_attr, global_x, w_slab):
    """Fused, batched MetaLayer.forward.

    x          (B, N, FX)     node features
    edge_index (B, E, 2)      int32 [row | col] per edge (local node ids)
    edge_attr  (B, E, FE)
    global_x   (B, 1, FU)
    w_slab     (K_SLAB, 128)  packed params from pack_params()

    Returns lane-dense 128-wide outputs (x_new, e_new, u_new); real features
    live in lanes [:FX_OUT]/[:FE_OUT]/[:FU_OUT], other lanes are exactly zero.
    """
    B, n_nodes, fx = x.shape
    n_edges, fe = edge_attr.shape[1], edge_attr.shape[2]
    fu = global_x.shape[2]

    in_specs = [
        pl.BlockSpec((K_SLAB, LANE), lambda b: (0, 0)),        # grid-resident slab
        pl.BlockSpec((None, n_edges, 2), lambda b: (b, 0, 0)),
        pl.BlockSpec((None, n_nodes, fx), lambda b: (b, 0, 0)),
        pl.BlockSpec((None, n_edges, fe), lambda b: (b, 0, 0)),
        pl.BlockSpec((None, 1, fu), lambda b: (b, 0, 0)),
    ]
    out_specs = (
        pl.BlockSpec((None, n_edges, LANE), lambda b: (b, 0, 0)),
        pl.BlockSpec((None, n_nodes, LANE), lambda b: (b, 0, 0)),
        pl.BlockSpec((None, 1, LANE), lambda b: (b, 0, 0)),
    )
    e_out, x_out, u_out = pl.pallas_call(
        meta_kernel,
        grid=(B,),
        in_specs=in_specs,
        out_specs=out_specs,
        out_shape=(
            jax.ShapeDtypeStruct((B, n_edges, LANE), jnp.float32),
            jax.ShapeDtypeStruct((B, n_nodes, LANE), jnp.float32),
            jax.ShapeDtypeStruct((B, 1, LANE), jnp.float32),
        ),
        compiler_params=pltpu.CompilerParams(
            dimension_semantics=("parallel",)),   # 2 TCs on v7x
    )(w_slab, edge_index, x, edge_attr, global_x)

    return x_out, e_out, u_out


# ----------------------------- reference (pure JAX, single graph) -----------------------------
def meta_layer_reference(x, idx, edge_attr, u, params):
    row, col = idx[:, 0], idx[:, 1]
    src, dst = x[row], x[col]
    e = jnp.maximum(
        src @ params["We_src"] + dst @ params["We_dst"]
        + edge_attr @ params["We_e"] + u @ params["We_u"] + params["be"], 0.0)
    seg_sum = jax.ops.segment_sum(e, col, num_segments=N)
    deg = jax.ops.segment_sum(jnp.ones((E,), jnp.float32), col, num_segments=N)
    agg = seg_sum / jnp.maximum(deg, 1.0)[:, None]
    x_new = jnp.maximum(
        x @ params["Wn_x"] + agg @ params["Wn_agg"]
        + u @ params["Wn_u"] + params["bn"], 0.0)
    u_new = jnp.maximum(
        u @ params["Wg_u"]
        + jnp.mean(x_new, axis=0, keepdims=True) @ params["Wg_x"] + params["bg"], 0.0)
    return x_new, e, u_new


# ----------------------------- main -----------------------------
if __name__ == "__main__":
    B = 4  # batch of independent small graphs (amortizes launch/DMA overhead)
    key = jax.random.PRNGKey(0)
    keys = jax.random.split(key, 16)

    # batched inputs
    x = jax.random.normal(keys[0], (B, N, FX), jnp.float32)
    edge_attr = jax.random.normal(keys[1], (B, E, FE), jnp.float32)
    global_x = jax.random.normal(keys[2], (B, 1, FU), jnp.float32)
    e_ar = jnp.arange(E, dtype=jnp.int32)
    b_ar = jnp.arange(B, dtype=jnp.int32)
    row = jnp.broadcast_to(e_ar % N, (B, E))
    col = (e_ar[None, :] * 3 + 1 + b_ar[:, None]) % N
    edge_index = jnp.stack([row, col], axis=-1).astype(jnp.int32)   # (B, E, 2)

    # deterministic synthetic parameters (shared across graphs, no checkpoint)
    params = {
        "We_src": 0.1 * jax.random.normal(keys[3], (FX, FE_OUT), jnp.float32),
        "We_dst": 0.1 * jax.random.normal(keys[4], (FX, FE_OUT), jnp.float32),
        "We_e":   0.1 * jax.random.normal(keys[5], (FE, FE_OUT), jnp.float32),
        "We_u":   0.1 * jax.random.normal(keys[6], (FU, FE_OUT), jnp.float32),
        "be":     0.1 * jax.random.normal(keys[7], (1, FE_OUT), jnp.float32),
        "Wn_x":   0.1 * jax.random.normal(keys[8], (FX, FX_OUT), jnp.float32),
        "Wn_agg": 0.1 * jax.random.normal(keys[9], (FE_OUT, FX_OUT), jnp.float32),
        "Wn_u":   0.1 * jax.random.normal(keys[10], (FU, FX_OUT), jnp.float32),
        "bn":     0.1 * jax.random.normal(keys[11], (1, FX_OUT), jnp.float32),
        "Wg_u":   0.1 * jax.random.normal(keys[12], (FU, FU_OUT), jnp.float32),
        "Wg_x":   0.1 * jax.random.normal(keys[13], (FX_OUT, FU_OUT), jnp.float32),
        "bg":     0.1 * jax.random.normal(keys[14], (1, FU_OUT), jnp.float32),
    }

    # one-time parameter prep: single packed (416, 128) slab
    w_slab = jax.block_until_ready(pack_params(params))

    x_out, e_out, u_out = meta_layer_forward(x, edge_index, edge_attr, global_x, w_slab)
    jax.block_until_ready((x_out, e_out, u_out))

    # test-side verification (slicing the lane-dense slabs happens only here)
    x_ref, e_ref, u_ref = jax.vmap(
        lambda a, i, b, c: meta_layer_reference(a, i, b, c, params)
    )(x, edge_index, edge_attr, global_x)

    tol = dict(rtol=2e-3, atol=2e-3)   # covers pl.reciprocal(approx=True) error
    assert jnp.allclose(x_out[..., :FX_OUT], x_ref, **tol), "node output mismatch"
    assert jnp.allclose(e_out[..., :FE_OUT], e_ref, **tol), "edge output mismatch"
    assert jnp.allclose(u_out[..., :FU_OUT], u_ref, **tol), "global output mismatch"

    print("KERNEL_OK")
</pallas_src>

<mosaic_0001>
module attributes {stable_mosaic.version = 11 : i64} {
  func.func @meta_kernel(%arg0: i32, %arg1: memref<416x128xf32, #tpu.memory_space<vmem>>, %arg2: memref<1x16x2xi32, #tpu.memory_space<vmem>>, %arg3: memref<1x8x32xf32, #tpu.memory_space<vmem>>, %arg4: memref<1x16x16xf32, #tpu.memory_space<vmem>>, %arg5: memref<1x1x8xf32, #tpu.memory_space<vmem>>, %arg6: memref<1x16x128xf32, #tpu.memory_space<vmem>>, %arg7: memref<1x8x128xf32, #tpu.memory_space<vmem>>, %arg8: memref<1x1x128xf32, #tpu.memory_space<vmem>>) attributes {dimension_semantics = [#tpu.dimension_semantics<parallel>], iteration_bounds = array<i64: 4>, scalar_prefetch = 0 : i64, scratch_operands = 0 : i64, tpu.core_type = #tpu.core_type<tc>, window_params = [{pipeline_mode = #tpu.pipeline_mode<synchronous>, transform_indices = @transform_0, window_bounds = array<i64: 416, 128>}, {transform_indices = @transform_1, window_bounds = array<i64: 1, 16, 2>}, {transform_indices = @transform_2, window_bounds = array<i64: 1, 8, 32>}, {transform_indices = @transform_3, window_bounds = array<i64: 1, 16, 16>}, {transform_indices = @transform_4, window_bounds = array<i64: 1, 1, 8>}, {transform_indices = @transform_5, window_bounds = array<i64: 1, 16, 128>}, {transform_indices = @transform_6, window_bounds = array<i64: 1, 8, 128>}, {transform_indices = @transform_7, window_bounds = array<i64: 1, 1, 128>}]} {
    %c0 = arith.constant 0 : index
    %c0_0 = arith.constant 0 : index
    %c0_1 = arith.constant 0 : index
    %0 = vector.load %arg3[%c0, %c0_0, %c0_1] : memref<1x8x32xf32, #tpu.memory_space<vmem>>, vector<1x8x32xf32>
    %1 = vector.shape_cast %0 : vector<1x8x32xf32> to vector<8x32xf32>
    %c0_2 = arith.constant 0 : index
    %c0_3 = arith.constant 0 : index
    %c0_4 = arith.constant 0 : index
    %2 = vector.load %arg4[%c0_2, %c0_3, %c0_4] : memref<1x16x16xf32, #tpu.memory_space<vmem>>, vector<1x16x16xf32>
    %3 = vector.shape_cast %2 : vector<1x16x16xf32> to vector<16x16xf32>
    %c0_5 = arith.constant 0 : index
    %c0_6 = arith.constant 0 : index
    %c0_7 = arith.constant 0 : index
    %4 = vector.load %arg5[%c0_5, %c0_6, %c0_7] : memref<1x1x8xf32, #tpu.memory_space<vmem>>, vector<1x1x8xf32>
    %5 = vector.shape_cast %4 : vector<1x1x8xf32> to vector<1x8xf32>
    %c0_8 = arith.constant 0 : index
    %c0_9 = arith.constant 0 : index
    %c0_10 = arith.constant 0 : index
    %6 = vector.load %arg2[%c0_8, %c0_9, %c0_10] : memref<1x16x2xi32, #tpu.memory_space<vmem>>, vector<1x16x2xi32>
    %7 = vector.shape_cast %6 : vector<1x16x2xi32> to vector<16x2xi32>
    %8 = vector.extract_strided_slice %7 {offsets = [0, 0], sizes = [16, 1], strides = [1, 1]} : vector<16x2xi32> to vector<16x1xi32>
    %9 = vector.extract_strided_slice %7 {offsets = [0, 1], sizes = [16, 1], strides = [1, 1]} : vector<16x2xi32> to vector<16x1xi32>
    %10 = tpu.iota {dimensions = array<i32: 1>} : vector<16x8xi32>
    %11 = vector.broadcast %8 : vector<16x1xi32> to vector<16x8xi32>
    %12 = arith.cmpi eq, %10, %11 : vector<16x8xi32>
    %13 = arith.extui %12 : vector<16x8xi1> to vector<16x8xi32>
    %14 = arith.sitofp %13 : vector<16x8xi32> to vector<16x8xf32>
    %15 = vector.broadcast %9 : vector<16x1xi32> to vector<16x8xi32>
    %16 = arith.cmpi eq, %10, %15 : vector<16x8xi32>
    %17 = arith.extui %16 : vector<16x8xi1> to vector<16x8xi32>
    %18 = arith.sitofp %17 : vector<16x8xi32> to vector<16x8xf32>
    %cst = arith.constant dense<0.000000e+00> : vector<16x32xf32>
    %19 = tpu.matmul %14, %1, %cst {dimension_numbers = #tpu.dot_dimension_numbers<[1], [0], [0], [1], [0, 0, 1, 1], [], []>} : vector<16x8xf32>, vector<8x32xf32>, vector<16x32xf32> -> vector<16x32xf32>
    %cst_11 = arith.constant dense<0.000000e+00> : vector<16x32xf32>
    %20 = tpu.matmul %18, %1, %cst_11 {dimension_numbers = #tpu.dot_dimension_numbers<[1], [0], [0], [1], [0, 0, 1, 1], [], []>} : vector<16x8xf32>, vector<8x32xf32>, vector<16x32xf32> -> vector<16x32xf32>
    %21 = vector.shape_cast %5 : vector<1x8xf32> to vector<1x8xf32>
    %22 = vector.broadcast %21 : vector<1x8xf32> to vector<16x8xf32>
    %23 = tpu.concatenate %19, %20, %3, %22 in 1 : vector<16x32xf32>, vector<16x32xf32>, vector<16x16xf32>, vector<16x8xf32> -> vector<16x88xf32>
    %c0_12 = arith.constant 0 : index
    %c0_13 = arith.constant 0 : index
    %24 = vector.load %arg1[%c0_12, %c0_13] : memref<416x128xf32, #tpu.memory_space<vmem>>, vector<88x128xf32>
    %cst_14 = arith.constant dense<0.000000e+00> : vector<16x128xf32>
    %25 = tpu.matmul %23, %24, %cst_14 {dimension_numbers = #tpu.dot_dimension_numbers<[1], [0], [0], [1], [0, 0, 1, 1], [], []>} : vector<16x88xf32>, vector<88x128xf32>, vector<16x128xf32> -> vector<16x128xf32>
    %c88 = arith.constant 88 : index
    %c0_15 = arith.constant 0 : index
    %26 = vector.load %arg1[%c88, %c0_15] : memref<416x128xf32, #tpu.memory_space<vmem>>, vector<1x128xf32>
    %27 = vector.broadcast %26 : vector<1x128xf32> to vector<16x128xf32>
    %28 = arith.addf %25, %27 : vector<16x128xf32>
    %cst_16 = arith.constant 0.000000e+00 : f32
    %29 = vector.broadcast %cst_16 : f32 to vector<16x128xf32>
    %30 = arith.maximumf %28, %29 : vector<16x128xf32>
    %c0_17 = arith.constant 0 : index
    %c0_18 = arith.constant 0 : index
    %c0_19 = arith.constant 0 : index
    %31 = vector.load %arg6[%c0_17, %c0_18, %c0_19] : memref<1x16x128xf32, #tpu.memory_space<vmem>>, vector<1x16x128xf32>
    %32 = vector.shape_cast %31 : vector<1x16x128xf32> to vector<16x128xf32>
    %33 = vector.shape_cast %30 : vector<16x128xf32> to vector<1x16x128xf32>
    tpu.vector_store %arg6[%c0_17, %c0_18, %c0_19], %33 {strides = array<i32>} : memref<1x16x128xf32, #tpu.memory_space<vmem>>, vector<1x16x128xf32>,
    %cst_20 = arith.constant dense<0.000000e+00> : vector<8x128xf32>
    %34 = tpu.matmul %18, %30, %cst_20 {dimension_numbers = #tpu.dot_dimension_numbers<[0], [0], [1], [1], [0, 1, 1, 1], [], []>} : vector<16x8xf32>, vector<16x128xf32>, vector<8x128xf32> -> vector<8x128xf32>
    %cst_21 = arith.constant 1.000000e+00 : f32
    %35 = vector.broadcast %cst_21 : f32 to vector<16x1xf32>
    %cst_22 = arith.constant dense<0.000000e+00> : vector<8x1xf32>
    %36 = tpu.matmul %18, %35, %cst_22 {dimension_numbers = #tpu.dot_dimension_numbers<[0], [0], [1], [1], [0, 1, 1, 1], [], []>} : vector<16x8xf32>, vector<16x1xf32>, vector<8x1xf32> -> vector<8x1xf32>
    %cst_23 = arith.constant 1.000000e+00 : f32
    %37 = vector.broadcast %cst_23 : f32 to vector<8x1xf32>
    %38 = arith.maximumf %36, %37 : vector<8x1xf32>
    %39 = tpu.reciprocal %38 {approx = true} : vector<8x1xf32> -> vector<8x1xf32>
    %40 = vector.broadcast %39 : vector<8x1xf32> to vector<8x128xf32>
    %41 = arith.mulf %34, %40 : vector<8x128xf32>
    %42 = vector.shape_cast %5 : vector<1x8xf32> to vector<1x8xf32>
    %43 = vector.broadcast %42 : vector<1x8xf32> to vector<8x8xf32>
    %44 = tpu.concatenate %1, %41, %43 in 1 : vector<8x32xf32>, vector<8x128xf32>, vector<8x8xf32> -> vector<8x168xf32>
    %c96 = arith.constant 96 : index
    %c0_24 = arith.constant 0 : index
    %45 = vector.load %arg1[%c96, %c0_24] : memref<416x128xf32, #tpu.memory_space<vmem>>, vector<168x128xf32>
    %cst_25 = arith.constant dense<0.000000e+00> : vector<8x128xf32>
    %46 = tpu.matmul %44, %45, %cst_25 {dimension_numbers = #tpu.dot_dimension_numbers<[1], [0], [0], [1], [0, 0, 1, 1], [], []>} : vector<8x168xf32>, vector<168x128xf32>, vector<8x128xf32> -> vector<8x128xf32>
    %c264 = arith.constant 264 : index
    %c0_26 = arith.constant 0 : index
    %47 = vector.load %arg1[%c264, %c0_26] : memref<416x128xf32, #tpu.memory_space<vmem>>, vector<1x128xf32>
    %48 = vector.broadcast %47 : vector<1x128xf32> to vector<8x128xf32>
    %49 = arith.addf %46, %48 : vector<8x128xf32>
    %cst_27 = arith.constant 0.000000e+00 : f32
    %50 = vector.broadcast %cst_27 : f32 to vector<8x128xf32>
    %51 = arith.maximumf %49, %50 : vector<8x128xf32>
    %c0_28 = arith.constant 0 : index
    %c0_29 = arith.constant 0 : index
    %c0_30 = arith.constant 0 : index
    %52 = vector.load %arg7[%c0_28, %c0_29, %c0_30] : memref<1x8x128xf32, #tpu.memory_space<vmem>>, vector<1x8x128xf32>
    %53 = vector.shape_cast %52 : vector<1x8x128xf32> to vector<8x128xf32>
    %54 = vector.shape_cast %51 : vector<8x128xf32> to vector<1x8x128xf32>
    tpu.vector_store %arg7[%c0_28, %c0_29, %c0_30], %54 {strides = array<i32>} : memref<1x8x128xf32, #tpu.memory_space<vmem>>, vector<1x8x128xf32>,
    %cst_31 = arith.constant dense<0.000000e+00> : vector<128xf32>
    %55 = vector.multi_reduction <add>, %51, %cst_31 [0] : vector<8x128xf32> to vector<128xf32>
    %56 = vector.shape_cast %55 : vector<128xf32> to vector<1x128xf32>
    %cst_32 = arith.constant 8.000000e+00 : f32
    %57 = vector.broadcast %cst_32 : f32 to vector<1x128xf32>
    %58 = arith.divf %56, %57 : vector<1x128xf32>
    %59 = tpu.concatenate %5, %58 in 1 : vector<1x8xf32>, vector<1x128xf32> -> vector<1x136xf32>
    %c272 = arith.constant 272 : index
    %c0_33 = arith.constant 0 : index
    %60 = vector.load %arg1[%c272, %c0_33] : memref<416x128xf32, #tpu.memory_space<vmem>>, vector<136x128xf32>
    %cst_34 = arith.constant dense<0.000000e+00> : vector<1x128xf32>
    %61 = tpu.matmul %59, %60, %cst_34 {dimension_numbers = #tpu.dot_dimension_numbers<[1], [0], [0], [1], [0, 0, 1, 1], [], []>} : vector<1x136xf32>, vector<136x128xf32>, vector<1x128xf32> -> vector<1x128xf32>
    %c408 = arith.constant 408 : index
    %c0_35 = arith.constant 0 : index
    %62 = vector.load %arg1[%c408, %c0_35] : memref<416x128xf32, #tpu.memory_space<vmem>>, vector<1x128xf32>
    %63 = arith.addf %61, %62 : vector<1x128xf32>
    %cst_36 = arith.constant 0.000000e+00 : f32
    %64 = vector.broadcast %cst_36 : f32 to vector<1x128xf32>
    %65 = arith.maximumf %63, %64 : vector<1x128xf32>
    %c0_37 = arith.constant 0 : index
    %c0_38 = arith.constant 0 : index
    %c0_39 = arith.constant 0 : index
    %66 = vector.load %arg8[%c0_37, %c0_38, %c0_39] : memref<1x1x128xf32, #tpu.memory_space<vmem>>, vector<1x1x128xf32>
    %67 = vector.shape_cast %66 : vector<1x1x128xf32> to vector<1x128xf32>
    %68 = vector.shape_cast %65 : vector<1x128xf32> to vector<1x1x128xf32>
    tpu.vector_store %arg8[%c0_37, %c0_38, %c0_39], %68 {strides = array<i32>} : memref<1x1x128xf32, #tpu.memory_space<vmem>>, vector<1x1x128xf32>,
    return
  }
  func.func @transform_0(%arg0: i32) -> (i32, i32) {
    %c0_i32 = arith.constant 0 : i32
    %c0_i32_0 = arith.constant 0 : i32
    %c0_i32_1 = arith.constant 0 : i32
    return %c0_i32, %c0_i32_0 : i32, i32
  }
  func.func @transform_1(%arg0: i32) -> (i32, i32, i32) {
    %c0_i32 = arith.constant 0 : i32
    %c0_i32_0 = arith.constant 0 : i32
    %c0_i32_1 = arith.constant 0 : i32
    return %arg0, %c0_i32, %c0_i32_0 : i32, i32, i32
  }
  func.func @transform_2(%arg0: i32) -> (i32, i32, i32) {
    %c0_i32 = arith.constant 0 : i32
    %c0_i32_0 = arith.constant 0 : i32
    %c0_i32_1 = arith.constant 0 : i32
    return %arg0, %c0_i32, %c0_i32_0 : i32, i32, i32
  }
  func.func @transform_3(%arg0: i32) -> (i32, i32, i32) {
    %c0_i32 = arith.constant 0 : i32
    %c0_i32_0 = arith.constant 0 : i32
    %c0_i32_1 = arith.constant 0 : i32
    return %arg0, %c0_i32, %c0_i32_0 : i32, i32, i32
  }
  func.func @transform_4(%arg0: i32) -> (i32, i32, i32) {
    %c0_i32 = arith.constant 0 : i32
    %c0_i32_0 = arith.constant 0 : i32
    %c0_i32_1 = arith.constant 0 : i32
    return %arg0, %c0_i32, %c0_i32_0 : i32, i32, i32
  }
  func.func @transform_5(%arg0: i32) -> (i32, i32, i32) {
    %c0_i32 = arith.constant 0 : i32
    %c0_i32_0 = arith.constant 0 : i32
    %c0_i32_1 = arith.constant 0 : i32
    return %arg0, %c0_i32, %c0_i32_0 : i32, i32, i32
  }
  func.func @transform_6(%arg0: i32) -> (i32, i32, i32) {
    %c0_i32 = arith.constant 0 : i32
    %c0_i32_0 = arith.constant 0 : i32
    %c0_i32_1 = arith.constant 0 : i32
    return %arg0, %c0_i32, %c0_i32_0 : i32, i32, i32
  }
  func.func @transform_7(%arg0: i32) -> (i32, i32, i32) {
    %c0_i32 = arith.constant 0 : i32
    %c0_i32_0 = arith.constant 0 : i32
    %c0_i32_1 = arith.constant 0 : i32
    return %arg0, %c0_i32, %c0_i32_0 : i32, i32, i32
  }
}

</mosaic_0001>

<bundles_post_ra>
// kernel: meta_layer_forward.1
= control target key start
LH: loop header
LB: loop body
LE: loop exit
PB: predicated region body
PF: predicated region fallthrough
CT: control target
= control target key end

     0   :  { %13 = vsyncpa [#allocation3], 0  ;;  %s2210_s0 = inlined_call_operand.hbm [shape: f32[416,128], index: 0, kind: input, shape index: {}]   ;;  %s2211_s1 = inlined_call_operand.vmem [shape: s32[4,16,2], index: 1, kind: input, shape index: {}]   ;;  %s2212_s2 = inlined_call_operand.hbm [shape: f32[4,8,32], index: 2, kind: input, shape index: {}]   ;;  %s2213_s3 = inlined_call_operand.vmem [shape: f32[4,16,16], index: 3, kind: input, shape index: {}]   ;;  %s2214_s4 = inlined_call_operand.vmem [shape: f32[4,1,8], index: 4, kind: input, shape index: {}]   ;;  %s2215_s5 = inlined_call_operand.hbm [shape: f32[4,16,128], index: 5, kind: output, shape index: {0}]   ;;  %s2216_s6 = inlined_call_operand.hbm [shape: f32[4,8,128], index: 6, kind: output, shape index: {1}]   ;;  %s2217_s7 = inlined_call_operand.hbm [shape: f32[4,1,128], index: 7, kind: output, shape index: {2}]  }
   0x1   :  { %14 = vsyncpa [#allocation6], 0 }
   0x2   :  { %16 = vsyncpa [#allocation6 + $0x1], 0 }
   0x3   :  { %17 = vsyncpa [#allocation4], 0 }
   0x4   :  { %19 = vsyncpa [#allocation4 + $0x1], 0 }
   0x5   :  { %20 = vsyncpa [#allocation9], 0 }
   0x6   :  { %22 = vsyncpa [#allocation9 + $0x1], 0  ;;  %s1861_s24 = smov 0   ;;  %s1863_s25 = smov 0  }
   0x7   :  { %s1865_s26 = smov 0   ;;  %s1867_s27 = smov 0  }
   0x8 LB: > { %s1882_s28 = sadd.s32 4294967295, %s1801_s27   ;;  %s2221_s29 = sadd.s32 4294967294, %s1801_s27   ;;  %s1801_s27 = sphi %s1867_s27, %s2240_s27   ;;  %s1797_s26 = sphi %s1865_s26, %s2239_s26   ;;  %s1793_s25 = sphi %s1863_s25, %s2238_s25   ;;  %s1789_s24 = sphi %s1861_s24, %s2237_s24  }
   0x9   : > { %p95_p0 = scmp.ne.s32.totalorder %s1793_s25, %s1789_s24  ;;  %p2218_p1 = scmp.eq.s32.totalorder %s1882_s28, 0 }
   0xa   : > { %p177_p3 = scmp.eq.s32.totalorder %s2221_s29, 3  ;;  %p1335_p5 = scmp.ge.s32.totalorder %s1801_s27, 1 }
   0xb   : > { %p1893_p4 = por %p2218_p1, %p95_p0  ;;  %p236_p7 = scmp.lt.s32.totalorder %s1801_s27, 5 }
   0xc   : > { %p1898_p6 = por %p177_p3, %p95_p0  ;;  %s1803_s10 = smov [#allocation2]  }
   0xd   : > { %s2223_s30 = scalar_select %p1893_p4, 1, 0 }
   0xe   : > { %s2224_s8 = scalar_select %p1898_p6, 1, 0 }
   0xf   : > { %p1903_p8 = pnand %p1335_p5, %p236_p7  ;;  %s248_s11 = sshll.u32 %s1803_s10, 4  ;;  %s249_s11 = int_to_ptr.vmem [resolvable:$true] %s248_s11 }
  0x10   : > { %s1916_s13 = sadd.s32 1, %s1801_s27   ;;  %s82_s14 = sadd.s32 1, %s1797_s26 }
  0x11   : > { %s2225_s9 = scalar_select %p1903_p8, 1, 0 }
  0x12   : > { %p1541_p9 = pneg %p1903_p8  ;;  %s79_s15 = ssub.s32 %s1801_s27, %s1916_s13 }
  0x13   : > { %s1613_s18 = scalar_lea.hbm %s2210_s0, 6656 }
  0x14   : > { %p1911_p10 = pnand %p1541_p9, %p2218_p1  ;;  %p1614_p11 = scmp.ne.s32.totalorder %s2210_s0, %s1613_s18 }
  0x15   : > { %p1620_p3 = scmp.lt.u32.totalorder %s1613_s18, %s2210_s0 }
  0x16   : > { %p1615_p12 = pneg %p1911_p10 }
  0x18   : > { %p1616_p13 = pnand %p1615_p12, %p1614_p11 }
  0x1a   : > { %p1617_p0 = pneg %p1616_p13 }
  0x1c   : > { %p1622_p5 = pnand %p1620_p3, %p1617_p0 }
  0x1e   : > { %1625 = shalt.err (!%p1622_p5)
}
  0x1f   : > { %s1626_s23 = scalar_lea.vmem %s249_s11, 6656  ;;  %p1634_p2 = scmp.lt.s32.totalorder %s249_s11, %s249_s11 }
  0x20   : > { %p1627_p7 = scmp.ne.s32.totalorder %s249_s11, %s1626_s23  ;;  %p1635_p6 = scmp.lt.s32.totalorder %s1626_s23, %s1626_s23 }
  0x22   : > { %p1629_p9 = pnand %p1627_p7, %p1615_p12  ;;  %p1636_p4 = por %p1635_p6, %p1634_p2 }
  0x24   : > { %p1630_p1 = pneg %p1629_p9 }
  0x26   : > { %p1637_p8 = pnand %p1636_p4, %p1630_p1 }
  0x28   : > { %1640 = shalt.err (!%p1637_p8)
}
  0x29   : > { %s1804_s10 = smov 128   ;;  %s1805_s16 = smov 8  }
  0x2a   : > { %1544 = dma.hbm_to_vmem [thread:$0]  (!%p1911_p10), %s2210_s0, 6656, %s249_s11, [#allocation3], %s1804_s10, %s1804_s10, %s1805_s16  }
  0x2b   : > { %p80_p11 = scmp.eq.s32.totalorder %s79_s15, 0  ;;  %p89_p2 = scmp.ne.s32.totalorder %s1797_s26, %s1793_s25 }
  0x2c   : > { %p90_p1 = scmp.eq.s32.totalorder %s1801_s27, 0  ;;  %p1560_p4 = scmp.lt.s32.totalorder %s1801_s27, 4 }
  0x2d   : > { %s1942_s19 = scalar_select %p80_p11, %s1797_s26, %s82_s14  }
  0x2e   : > { %p91_p6 = por %p90_p1, %p89_p2  ;;  %p2227_p8 = scmp.eq.s32.totalorder %s1882_s28, 3 }
  0x2f   : > { %s270_s21 = sand.u32 1, %s1797_s26   ;;  %s1339_s22 = sshll.u32 %s1801_s27, 7 }
  0x30   : > { %p1946_p12 = por %p2227_p8, %p89_p2  ;;  %s1338_s23 = sshll.u32 %s270_s21, 3 }
  0x31   : > { %s1955_s17 = scalar_lea.hbm %s2212_s2, %s1339_s22  ;;  %s274_s11 = scalar_lea.vmem [#allocation5], %s1338_s23 }
  0x32   : > { %s281_s14 = sshll.u32 %s274_s11, 4  ;;  %p1957_p10 = pnand %p1560_p4, %p91_p6  ;;  %s1961_s14 = int_to_ptr.vmem [resolvable:$true] %s281_s14 }
  0x33   : > { %s271_s10 = scalar_lea.sflag [#allocation6], %s270_s21  ;;  %s1641_s16 = scalar_lea.hbm %s1955_s17, 128 }
  0x34   : > { %p1642_p13 = scmp.ne.s32.totalorder %s1955_s17, %s1641_s16  ;;  %p1643_p0 = pneg %p1957_p10 }
  0x35   : > { %s1646_s22 = scalar_lea.hbm %s2212_s2, 512  ;;  %p1647_p7 = scmp.lt.u32.totalorder %s1955_s17, %s2212_s2 }
  0x36   : > { %p1644_p3 = pnand %p1643_p0, %p1642_p13  ;;  %p1648_p9 = scmp.lt.u32.totalorder %s1646_s22, %s1641_s16 }
  0x37   : > { %p1650_p2 = scmp.lt.u32.totalorder %s1641_s16, %s1955_s17 }
  0x38   : > { %p1645_p5 = pneg %p1644_p3  ;;  %p1649_p11 = por %p1648_p9, %p1647_p7 }
  0x3a   : > { %p1651_p1 = por %p1650_p2, %p1649_p11 }
  0x3c   : > { %p1652_p4 = pnand %p1651_p1, %p1645_p5 }
  0x3e   : > { %1655 = shalt.err (!%p1652_p4)
}
  0x3f   : > { %s1656_s21 = scalar_lea.vmem %s1961_s14, 128  ;;  %s1806_s11 = smov [#allocation5]  }
  0x40   : > { %p1657_p6 = scmp.ne.s32.totalorder %s1961_s14, %s1656_s21  ;;  %s1661_s29 = sshll.u32 %s1806_s11, 4  ;;  %s1662_s29 = int_to_ptr.vmem [resolvable:$false] %s1661_s29 }
  0x41   : > { %s1663_s18 = scalar_lea.vmem %s1662_s29, 256  ;;  %p1664_p3 = scmp.lt.s32.totalorder %s1961_s14, %s1662_s29 }
  0x42   : > { %p1659_p8 = pnand %p1657_p6, %p1643_p0  ;;  %p1665_p7 = scmp.lt.s32.totalorder %s1663_s18, %s1656_s21 }
  0x44   : > { %p1660_p13 = pneg %p1659_p8  ;;  %p1666_p9 = por %p1665_p7, %p1664_p3 }
  0x46   : > { %p1667_p11 = pnand %p1666_p9, %p1660_p13 }
  0x48   : > { %1670 = shalt.err (!%p1667_p11)
}
  0x49   : > { %1548 = dma.hbm_to_vmem [thread:$0]  (!%p1957_p10), %s1955_s17, 128, %s1961_s14, %s271_s10  }
  0x4a   : > { %p2230_p5 = scmp.ne.s32.totalorder %s2225_s9, 0 }
  0x4b   : > { %p2231_p0 = scmp.eq.s32.totalorder (!%p2230_p5), %s1882_s28, 0 }
  0x4c   : > { %304 = sbr.rel (%p2230_p5) target bundleno = 1845 (0x735), region = 40 }
  0x53   : > { %1772 = dma.done.wait (%p2231_p0), [#allocation3], 6656   ;;  %p2232_p2 = pmov %p2231_p0 }
  0x54   : > { %s1995_s16 = sand.u32 1, %s1793_s25   ;;  %p2233_p10 = scmp.ne.s32.totalorder %s2223_s30, 0 }
  0x55   : > { %1774 = vsyncadd (%p2232_p2), [#allocation3], 4294960640  ;;  %s1342_s15 = sshll.u32 %s1995_s16, 3  ;;  %s311_s22 = scalar_lea.sflag [#allocation6], %s1995_s16 }
  0x56   : > { %s314_s17 = scalar_lea.vmem [#allocation5], %s1342_s15 }
  0x57   : > { %1776 = dma.done.wait (%p2233_p10), %s311_s22, 128  }
  0x58   : > { %1778 = vsyncadd (%p2233_p10), %s311_s22, 4294967168  ;;  %p367_p1 = scmp.lt.s32.totalorder %s1882_s28, 3  ;;  %v1807_v0 = vmov 1   ;;  %v1808_v1 = vmov 0   ;;  %v2015_v4 = vld [vmem:[%s314_s17] sm:$0xff]  ;;  %v386_v5 = vlaneseq  ;;  %vm412_vm0 = vcmask 64512  }
  0x59   : > { %1610 = vset.pattern.permute.xlu1 %v1807_v0  ;;  %1609 = vset.pattern.permute.xlu0 %v1808_v1  ;;  %v1809_v9 = vmov 0.0   ;;  %s1810_s29 = smov 64   ;;  %v608_v17 = vld [vmem:[#allocation2] sm:$0xff]  ;;  %v609_v18 = vld [vmem:[#allocation2 + $0x8] sm:$0xff]  ;;  %v610_v19 = vld [vmem:[#allocation2 + $0x10] sm:$0xff]  ;;  %s1812_s10 = smov 80  }
  0x5a   : > { %s2007_s9 = scalar_select %p367_p1, %s1882_s28, 3  ;;  %1401 = vmatprep.subr.mxu1 %v2015_v4  ;;  %v387_v6 = vand.u32 127, %v386_v5  ;;  %v1450_v20 = vpack.c.bf16 %v609_v18, %v608_v17  ;;  %v611_v21 = vld [vmem:[#allocation2 + $0x18] sm:$0xff]  ;;  %v612_v23 = vld [vmem:[#allocation2 + $0x20] sm:$0xff]  ;;  %v613_v24 = vld [vmem:[#allocation2 + $0x28] sm:$0xff]  ;;  %v577_v33 = vshrl.u32 %v386_v5, 7 }
  0x5b   : > { %1402 = vmatpush3.msra.mxu1 %v2015_v4  ;;  %v1454_v22 = vpack.c.bf16 %v611_v21, %v610_v19  ;;  %v1458_v25 = vpack.c.bf16 %v613_v24, %v612_v23  ;;  %v614_v26 = vld [vmem:[#allocation2 + $0x30] sm:$0xff]  ;;  %v615_v27 = vld [vmem:[#allocation2 + $0x38] sm:$0xff]  ;;  %v616_v29 = vld [vmem:[#allocation2 + $0x40] sm:$0xff]  ;;  %vm599_vm5 = vcmask 261120   ;;  %vm602_vm6 = vcmask 523264   ;;  %s2222_s30 = smov 8  }
  0x5c   : > { %s1373_s14 = sshll.u32 %s2007_s9, 4  ;;  %1406 = vmatprep.subr.mxu1 %v2015_v4  ;;  %1451 = vmatprep.subr.bf16.mxu0 %v1450_v20  ;;  %v1462_v28 = vpack.c.bf16 %v615_v27, %v614_v26  ;;  %v617_v30 = vld [vmem:[#allocation2 + $0x48] sm:$0xff]  ;;  %v618_v32 = vld [vmem:[#allocation2 + $0x50] sm:$0xff]  ;;  %s379_s17 = scalar_lea.vmem %s2214_s4, %s2007_s9  ;;  %v578_v36 = vsub.s32 0, %v577_v33  ;;  %vm605_vm7 = vcmask 654336   ;;  %vm624_vm8 = vcmask 719872  }
  0x5d   : > { %s371_s12 = scalar_lea.vmem %s2211_s1, %s1373_s14  ;;  %s2034_s11 = scalar_lea.vmem %s2213_s3, %s1373_s14  ;;  %1453 = vmatpush3.bf16.msra.mxu0 %v1450_v20  ;;  %v1466_v31 = vpack.c.bf16 %v617_v30, %v616_v29  ;;  %v2042_v37 = vld [vmem:[%s379_s17] sm:$0x1]  ;;  %v1813_v53 = vmov 0.0|0.0   ;;  %vm1814_vm9 = vmmov 0   ;;  %v1357_v54 = vld [vmem:[#allocation2 + $0x58] ss:$0 sm:$0xff] }
  0x5e   : > { %v384_v2 = vld [vmem:[%s371_s12] sm:$0xff]  ;;  %v385_v3 = vld [vmem:[%s371_s12 + $0x8] sm:$0xff]  ;;  %1455 = vmatprep.subr.bf16.mxu0 %v1454_v22  ;;  %s1811_s14 = smov 32   ;;  %v2048_v41 = vrot.slane %v2042_v37, %v578_v36  ;;  %s1343_s9 = sshll.u32 %s1995_s16, 4  ;;  %vm742_vm10 = vcmask 130048   ;;  %v909_v17 = vld [vmem:[#allocation2 + $0x90] sm:$0xff] }
  0x5f   : > { %401 = vperm.xlu1 %1610, %v384_v2   ;;  %389 = vperm.xlu0 %1609, %v384_v2   ;;  %v381_v16 = vld [vmem:[%s2034_s11] sm:$0xff]  ;;  %v382_v40 = vld [vmem:[%s2034_s11 + $0x8] sm:$0xff]  ;;  %s2059_s23 = scalar_lea.vmem [#allocation7], %s1343_s9  ;;  %v1815_v63 = vmov 1.0|1.0   ;;  %v910_v18 = vld [vmem:[#allocation2 + $0x98] sm:$0xff] }
  0x60   : > { %v1485_v19 = vpack.c.bf16 %v910_v18, %v909_v17  ;;  %v911_v20 = vld [vmem:[#allocation2 + $0xa0] sm:$0xff]  ;;  %v912_v21 = vld [vmem:[#allocation2 + $0xa8] sm:$0xff]  ;;  %v913_v23 = vld [vmem:[#allocation2 + $0xb0] sm:$0xff]  ;;  %vm929_vm11 = vcmask 326656   ;;  %s360_s12 = scalar_lea.vmem [#allocation8], %s1342_s15  ;;  %s1133_s15 = sshll.u32 %s2059_s23, 4  ;;  %s2098_s15 = int_to_ptr.vmem [resolvable:$true] %s1133_s15 }
  0x61   : > { %1457 = vmatpush3.bf16.msra.mxu0 %v1454_v22  ;;  %v1488_v22 = vpack.c.bf16 %v912_v21, %v911_v20  ;;  %v914_v24 = vld [vmem:[#allocation2 + $0xb8] sm:$0xff]  ;;  %v915_v26 = vld [vmem:[#allocation2 + $0xc0] sm:$0xff]  ;;  %v916_v27 = vld [vmem:[#allocation2 + $0xc8] sm:$0xff]  ;;  %s1115_s21 = sand.u32 1, %s1882_s28   ;;  %s1369_s11 = sshll.u32 %s1882_s28, 7 }
  0x62   : > { %1459 = vmatprep.subr.bf16.mxu0 %v1458_v25  ;;  %v917_v29 = vld [vmem:[#allocation2 + $0xd0] sm:$0xff]  ;;  %v918_v30 = vld [vmem:[#allocation2 + $0xd8] sm:$0xff]  ;;  %v920_v33 = vld [vmem:[#allocation2 + $0xe8] sm:$0xff]  ;;  %s2105_s22 = scalar_lea.hbm %s2216_s6, %s1369_s11  ;;  %s1149_s17 = sshll.u32 %s360_s12, 4  ;;  %s2107_s17 = int_to_ptr.vmem [resolvable:$true] %s1149_s17 }
  0x63   : > { %404 = vperm.xlu1 %1610, %v385_v3   ;;  %392 = vperm.xlu0 %1609, %v385_v3   ;;  %v922_v36 = vld [vmem:[#allocation2 + $0xf8] sm:$0xff]  ;;  %s1671_s9 = scalar_lea.vmem %s2107_s17, 128 }
  0x64   : > { %p1672_p4 = scmp.ne.s32.totalorder %s2107_s17, %s1671_s9 }
  0x65   : > { %1461 = vmatpush3.bf16.msra.mxu0 %v1458_v25  ;;  %v1491_v25 = vpack.c.bf16 %v914_v24, %v913_v23 }
  0x66   : > { %1463 = vmatprep.subr.bf16.mxu0 %v1462_v28  ;;  %p1673_p6 = pnand %p1672_p4, %p1946_p12 }
  0x67   : > { %590 = vrot.lane.b32.xlu0 %v381_v16, %s1810_s29 }
  0x68   : > { %p1674_p8 = pneg %p1673_p6 }
  0x69   : > { %1465 = vmatpush3.bf16.msra.mxu0 %v1462_v28  ;;  %v1494_v28 = vpack.c.bf16 %v916_v27, %v915_v26 }
  0x6a   : > { %1467 = vmatprep.subr.bf16.mxu0 %v1466_v31 }
  0x6d   : > { %1469 = vmatpush3.bf16.msra.mxu0 %v1466_v31  ;;  %v1497_v31 = vpack.c.bf16 %v918_v30, %v917_v29 }
  0x6e   : > { %1431 = vmatprep.subr.mxu0 %v618_v32 }
  0x71   : > { %1432 = vmatpush3.msra.mxu0 %v618_v32  ;;  %v919_v32 = vld [vmem:[#allocation2 + $0xe0] sm:$0xff] }
  0x72   : > { %1505 = vmatprep.subr.bf16.mxu0 %v1813_v53 }
  0xde   : > { %v402_v7 = vpop.permute.xlu1 %401  ;;  %v390_v8 = vpop.permute.xlu0 %389 }
  0xdf   : > { %vm394_vm1 = vcmp.eq.s32.totalorder %v387_v6, %v390_v8  ;;  %vm406_vm2 = vcmp.eq.s32.totalorder %v387_v6, %v402_v7  ;;  %v903_v7 = vld [vmem:[#allocation2 + $0x60] sm:$0xff]  ;;  %v904_v8 = vld [vmem:[#allocation2 + $0x68] sm:$0xff] }
  0xe0   : > { %v1349_v10 = vsel %vm394_vm1, 1.0, %v1809_v9  ;;  %v1351_v13 = vsel %vm406_vm2, 1.0, %v1809_v9 }
  0xe1   : > { %1403 = vmatprep.mubr.msk.f32.mxu1 %vm412_vm0, %v1349_v10  ;;  %v905_v10 = vld [vmem:[#allocation2 + $0x70] sm:$0xff] }
  0xe2   : > { %v405_v11 = vpop.permute.xlu1 %404  ;;  %v393_v12 = vpop.permute.xlu0 %392 }
  0xe3   : > { %vm395_vm3 = vcmp.eq.s32.totalorder %v387_v6, %v393_v12  ;;  %vm407_vm4 = vcmp.eq.s32.totalorder %v387_v6, %v405_v11  ;;  %v1476_v11 = vpack.c.bf16 %v904_v8, %v903_v7  ;;  %v906_v12 = vld [vmem:[#allocation2 + $0x78] sm:$0xff]  ;;  %v1362_v7 = vld [vmem:[#allocation2 + $0x108] ss:$0 sm:$0xff] }
  0xe4   : > { %v1350_v14 = vsel %vm395_vm3, 1.0, %v1809_v9  ;;  %v1352_v15 = vsel %vm407_vm4, 1.0, %v1809_v9 }
  0xe5   : > { %1404 = vmatmul.mubr.msk.f32.vlgmr.msra.gmra.mrb[0].mxu1 %vm412_vm0, %v1350_v14  ;;  %v907_v14 = vld [vmem:[#allocation2 + $0x80] sm:$0xff] }
  0xe6   : > { %1407 = vmatpush3.msra.mxu1 %v2015_v4  ;;  %1408 = vmatprep.mubr.msk.f32.mxu1 %vm412_vm0, %v1351_v13  ;;  %v591_v42 = vpop.permute.xlu0 %590 }
  0xe7   : > { %1470 = vmatprep.subr.bf16.mxu1 %v1813_v53 }
  0xe9   : > { %1409 = vmatmul.mubr.msk.f32.vlgmr.msra.gmra.mrb[2].mxu1 %vm412_vm0, %v1352_v15 }
  0xea   : > { %1440 = vmatprep.mubr.msk.f32.mxu1 %vm1814_vm9, %v1809_v9 }
 0x1b8   : > { %v1405_v34 = vpop.f32.mrb[0].mxu1 }
 0x1b9   : > { %v485_v35 = vpop.f32.mrb[1].mxu1 }
 0x1bc   : > { %v1410_v38 = vpop.f32.mrb[2].mxu1 }
 0x1bd   : > { %584 = vrot.lane.b32.xlu1 %v1410_v38, %s1811_s14  ;;  %v566_v39 = vpop.f32.mrb[3].mxu1 }
 0x1be   : > { %582 = vrot.lane.b32.xlu0 %v566_v39, %s1811_s14  ;;  %v923_v39 = vld [vmem:[#allocation2 + $0x100] sm:$0xff] }
 0x1c1   : > { %592 = vrot.lane.b32.xlu1 %v382_v40, %s1810_s29 }
 0x1c2   : > { %596 = vrot.lane.b32.xlu0 %v2048_v41, %s1812_s10  ;;  %s2110_s10 = scalar_lea.sflag [#allocation9], %s1115_s21 }
 0x1ea   : > { %710 = vxpose.xlu1.b32.start [1/2] (short) (narrow) %v1351_v13, 8  ;;  %v1479_v13 = vpack.c.bf16 %v906_v12, %v905_v10 }
 0x1ee   : > { %711 = vxpose.xlu1.b32.end [2/2] (short) (narrow) %v1352_v15, 8  ;;  %v908_v15 = vld [vmem:[#allocation2 + $0x88] sm:$0xff] }
 0x1ef   : > { %v1482_v16 = vpack.c.bf16 %v908_v15, %v907_v14  ;;  %v1034_v14 = vld [vmem:[#allocation2 + $0x190] sm:$0xff] }
 0x22f   : > { %v585_v43 = vpop.permute.xlu1 %584 }
 0x230   : > { %v583_v44 = vpop.permute.xlu0 %582  ;;  %v601_v46 = vsel %vm599_vm5, %v1405_v34, %v585_v43  ;;  %v1500_v34 = vpack.c.bf16 %v920_v33, %v919_v32 }
 0x231   : > { %v600_v45 = vsel %vm599_vm5, %v485_v35, %v583_v44  ;;  %v921_v35 = vld [vmem:[#allocation2 + $0xf0] sm:$0xff] }
 0x232   : > { %v603_v50 = vsel %vm602_vm6, %v600_v45, %v591_v42  ;;  %v1503_v38 = vpack.c.bf16 %v922_v36, %v921_v35 }
 0x233   : > { %v593_v47 = vpop.permute.xlu1 %592 }
 0x234   : > { %v604_v48 = vsel %vm602_vm6, %v601_v46, %v593_v47  ;;  %v597_v49 = vpop.permute.xlu0 %596  ;;  %v1018_v47 = vld [vmem:[#allocation2 + $0x110] sm:$0xff] }
 0x235   : > { %v607_v51 = vsel %vm605_vm7, %v604_v48, %v597_v49  ;;  %v606_v52 = vsel %vm605_vm7, %v603_v50, %v597_v49  ;;  %v1019_v48 = vld [vmem:[#allocation2 + $0x118] sm:$0xff]  ;;  %v1020_v49 = vld [vmem:[#allocation2 + $0x120] sm:$0xff] }
 0x236   : > { %1433 = vmatprep.mubr.msk.f32.mxu0 %vm624_vm8, %v606_v52  ;;  %v1506_v50 = vpack.c.bf16 %v1019_v48, %v1018_v47 }
 0x237   : > { %1434 = vmatmul.mubr.msk.f32.vlgmr.msra.gmra.mrb[0].mxu0 %vm624_vm8, %v607_v51  ;;  %v1021_v51 = vld [vmem:[#allocation2 + $0x128] sm:$0xff] }
 0x238   : > { %1507 = vmatpush1.bf16.msra.mxu0 %v1506_v50  ;;  %v1509_v52 = vpack.c.bf16 %v1021_v51, %v1020_v49 }
 0x239   : > { %1508 = vmatprep.subr.bf16.mxu0 %v1813_v53 }
 0x23c   : > { %1510 = vmatpush1.bf16.msra.mxu0 %v1509_v52 }
 0x23d   : > { %1511 = vmatprep.subr.bf16.mxu0 %v1813_v53 }
 0x26a   : > { %v726_v62 = vpop.trf.xlu1 }
 0x30a   : > { %v1435_v55 = vpop.f32.mrb[0].mxu0 }
 0x30b   : > { %v703_v56 = vadd.f32 %v1435_v55, %v1357_v54  ;;  %v697_v57 = vpop.f32.mrb[1].mxu0 }
 0x30c   : > { %v698_v58 = vadd.f32 %v1357_v54, %v697_v57  ;;  %v1023_v54 = vld [vmem:[#allocation2 + $0x138] sm:$0xff]  ;;  %v1025_v57 = vld [vmem:[#allocation2 + $0x148] sm:$0xff] }
 0x30d   : > { %v707_v59 = vmax.f32 %v703_v56, 0.0  ;;  %v1024_v56 = vld [vmem:[#allocation2 + $0x140] sm:$0xff] }
 0x30e   : > { %v706_v60 = vmax.f32 %v698_v58, 0.0  ;;  %v1026_v58 = vld [vmem:[#allocation2 + $0x150] sm:$0xff] }
 0x30f   : > { %709 = vst [vmem:[%s2059_s23 + $0x8] sm:$0xff] %v707_v59 }
 0x310   : > { %708 = vst [vmem:[%s2059_s23] sm:$0xff] %v706_v60  ;;  %v1471_v61 = vpack.c.bf16 %v707_v59, %v706_v60  ;;  %v1027_v59 = vld [vmem:[#allocation2 + $0x158] sm:$0xff]  ;;  %s1817_s23 = smov [#allocation8]  }
 0x311   : > { %v1518_v60 = vpack.c.bf16 %v1027_v59, %v1026_v58 }
 0x312   : > { %1472 = vmatpush3.bf16.msra.mxu1 %v1471_v61  ;;  %v1028_v61 = vld [vmem:[#allocation2 + $0x160] sm:$0xff] }
 0x313   : > { %1473 = vmatprep.subr.bf16.mxu1 %v1813_v53 }
 0x315   : > { %1441 = vmatmul.mubr.msk.f32.vlgmr.msra.gmra.mrb[4].mxu1 %vm742_vm10, %v726_v62 }
 0x316   : > { %1474 = vmatpush3.bf16.msra.mxu1 %v1815_v63  ;;  %1447 = vmatprep.mubr.msk.f32.mxu1 %vm1814_vm9, %v1809_v9 }
 0x317   : > { %1475 = vmatprep.subr.bf16.mxu1 %v1813_v53 }
 0x319   : > { %1448 = vmatmul.mubr.msk.f32.vlgmr.msra.gmra.mrb[6].mxu1 %vm742_vm10, %v726_v62  ;;  %v1029_v62 = vld [vmem:[#allocation2 + $0x168] sm:$0xff] }
 0x31a   : > { %1477 = vmatpush1.bf16.msra.mxu1 %v1476_v11  ;;  %v1521_v63 = vpack.c.bf16 %v1029_v62, %v1028_v61 }
 0x31b   : > { %1478 = vmatprep.subr.bf16.mxu1 %v1813_v53 }
 0x31e   : > { %1480 = vmatpush1.bf16.msra.mxu1 %v1479_v13 }
 0x31f   : > { %1481 = vmatprep.subr.bf16.mxu1 %v1813_v53 }
 0x322   : > { %1483 = vmatpush1.bf16.msra.mxu1 %v1482_v16 }
 0x323   : > { %1484 = vmatprep.subr.bf16.mxu1 %v1813_v53 }
 0x326   : > { %1486 = vmatpush1.bf16.msra.mxu1 %v1485_v19 }
 0x327   : > { %1487 = vmatprep.subr.bf16.mxu1 %v1813_v53 }
 0x32a   : > { %1489 = vmatpush1.bf16.msra.mxu1 %v1488_v22 }
 0x32b   : > { %1490 = vmatprep.subr.bf16.mxu1 %v1813_v53 }
 0x32e   : > { %1492 = vmatpush1.bf16.msra.mxu1 %v1491_v25 }
 0x32f   : > { %1493 = vmatprep.subr.bf16.mxu1 %v1813_v53 }
 0x332   : > { %1495 = vmatpush1.bf16.msra.mxu1 %v1494_v28 }
 0x333   : > { %1496 = vmatprep.subr.bf16.mxu1 %v1813_v53 }
 0x336   : > { %1498 = vmatpush1.bf16.msra.mxu1 %v1497_v31 }
 0x337   : > { %1499 = vmatprep.subr.bf16.mxu1 %v1813_v53 }
 0x33a   : > { %1501 = vmatpush1.bf16.msra.mxu1 %v1500_v34 }
 0x33b   : > { %1502 = vmatprep.subr.bf16.mxu1 %v1813_v53 }
 0x33e   : > { %1504 = vmatpush1.bf16.msra.mxu1 %v1503_v38 }
 0x33f   : > { %973 = vmatprep.subr.mxu1 %v1809_v9 }
 0x342   : > { %974 = vmatpush1.msra.mxu1 %v923_v39 }
 0x3e8   : > { %v812_v0 = vpop.f32.mrb[4].mxu1 }
 0x3e9   : > { %v1442_v1 = vpop.f32.mrb[5].mxu1 }
 0x3ea   : > { %v1031_v1 = vld [vmem:[#allocation2 + $0x178] sm:$0xff] }
 0x3ec   : > { %v882_v2 = vpop.f32.mrb[6].mxu1 }
 0x3ed   : > { %v886_v3 = vmax.f32 %v882_v2, 1.0  ;;  %v1449_v5 = vpop.f32.mrb[7].mxu1 }
 0x3ee   : > { %v1033_v5 = vld [vmem:[#allocation2 + $0x188] sm:$0xff] }
 0x3ef   : > { %1611 = vrcp.f32 %v886_v3  ;;  %v1032_v3 = vld [vmem:[#allocation2 + $0x180] sm:$0xff] }
 0x3f9   : > { %v1612_v6 = vpop.eup %1611 }
 0x3fa   : > { %890 = vperm.xlu0 %1609, %v1612_v6   ;;  %v1527_v6 = vpack.c.bf16 %v1033_v5, %v1032_v3 }
 0x479   : > { %v891_v40 = vpop.permute.xlu0 %890 }
 0x47a   : > { %v893_v42 = vmul.f32 %v891_v40, %v812_v0  ;;  %v1030_v0 = vld [vmem:[#allocation2 + $0x170] sm:$0xff] }
 0x47b   : > { %v1524_v2 = vpack.c.bf16 %v1031_v1, %v1030_v0 }
 0x47c   : > { %895 = vrot.lane.b32.xlu0 %v893_v42, %s1811_s14 }
 0x480   : > { %898 = vrot.lane.b32.xlu0 %v2048_v41, %s1811_s14  ;;  %v1022_v41 = vld [vmem:[#allocation2 + $0x130] sm:$0xff]  ;;  %s1375_s14 = sshll.u32 %s1882_s28, 8 }
 0x481   : > { %v1512_v55 = vpack.c.bf16 %v1023_v54, %v1022_v41 }
 0x483   : > { %1513 = vmatpush1.bf16.msra.mxu0 %v1512_v55 }
 0x484   : > { %1514 = vmatprep.subr.bf16.mxu0 %v1813_v53 }
 0x4ee   : > { %v896_v43 = vpop.permute.xlu0 %895 }
 0x4ef   : > { %v901_v46 = vsel %vm599_vm5, %v2015_v4, %v896_v43  ;;  %v1515_v4 = vpack.c.bf16 %v1025_v57, %v1024_v56 }
 0x4f1   : > { %1516 = vmatpush1.bf16.msra.mxu0 %v1515_v4 }
 0x4f2   : > { %v899_v44 = vpop.permute.xlu0 %898  ;;  %1517 = vmatprep.subr.bf16.mxu0 %v1813_v53 }
 0x4f3   : > { %v902_v45 = vsel %vm599_vm5, %v896_v43, %v899_v44 }
 0x4f4   : > { %1363 = vmatprep.mubr.msk.f32.mxu1 %vm929_vm11, %v902_v45 }
 0x4f5   : > { %998 = vmatmul.mubr.f32.vlgmr.msra.gmra.mrb[8].mxu1 %v901_v46  ;;  %1519 = vmatpush1.bf16.msra.mxu0 %v1518_v60 }
 0x4f6   : > { %1520 = vmatprep.subr.bf16.mxu0 %v1813_v53 }
 0x4f9   : > { %1522 = vmatpush1.bf16.msra.mxu0 %v1521_v63 }
 0x4fa   : > { %1523 = vmatprep.subr.bf16.mxu0 %v1813_v53 }
 0x4fd   : > { %1525 = vmatpush1.bf16.msra.mxu0 %v1524_v2 }
 0x4fe   : > { %1526 = vmatprep.subr.bf16.mxu0 %v1813_v53 }
 0x501   : > { %1528 = vmatpush1.bf16.msra.mxu0 %v1527_v6 }
 0x502   : > { %1070 = vmatprep.subr.mxu0 %v1809_v9 }
 0x505   : > { %1071 = vmatpush1.msra.mxu0 %v1034_v14 }
 0x5c8   : > { %v999_v8 = vpop.f32.mrb[8].mxu1 }
 0x5c9   : > { %v1000_v10 = vadd.f32 %v1362_v7, %v999_v8  ;;  %v1001_v11 = vpop.f32.mrb[9].mxu1 }
 0x5cb   : > { %v1003_v12 = vmax.f32 %v1000_v10, 0.0 }
 0x5cd   : > { %1004 = vst [vmem:[%s360_s12] sm:$0xff] %v1003_v12  ;;  %v1005_v13 = vrot.slane %v1003_v12, 4 }
 0x5cf   : > { %v1006_v15 = vadd.f32 %v1005_v13, %v1003_v12 }
 0x5d1   : > { %v1007_v16 = vrot.slane %v1006_v15, 2 }
 0x5d3   : > { %v1008_v53 = vadd.f32 %v1007_v16, %v1006_v15 }
 0x5d5   : > { %v1009_v17 = vrot.slane %v1008_v53, 1 }
 0x5d7   : > { %v1010_v9 = vadd.f32 %v1009_v17, %v1008_v53 }
 0x5d9   : > { %v1012_v18 = vmul.f32 0.125, %v1010_v9 }
 0x5db   : > { %1014 = vrot.lane.b32.xlu0 %v1012_v18, %s2222_s30  ;;  %s1675_s30 = sshll.u32 %s1817_s23, 4  ;;  %s1676_s30 = int_to_ptr.vmem [resolvable:$false] %s1675_s30 }
 0x5dc   : > { %s1677_s29 = scalar_lea.vmem %s1676_s30, 256  ;;  %p1678_p13 = scmp.lt.s32.totalorder %s2107_s17, %s1676_s30 }
 0x5dd   : > { %p1679_p3 = scmp.lt.s32.totalorder %s1677_s29, %s1671_s9 }
 0x5df   : > { %p1680_p7 = por %p1679_p3, %p1678_p13 }
 0x5e1   : > { %p1681_p9 = pnand %p1680_p7, %p1674_p8 }
 0x64d   : > { %v1015_v19 = vpop.permute.xlu0 %1014 }
 0x64e   : > { %v1017_v20 = vsel %vm412_vm0, %v2042_v37, %v1015_v19  ;;  %1364 = vmatprep.mubr.msk.f32.mxu0 %vm412_vm0, %v1015_v19 }
 0x64f   : > { %1103 = vmatmul.mubr.f32.vlgmr.msra.gmra.mrb[2].mxu0 %v1017_v20 }
 0x650   : > { %1684 = shalt.err (!%p1681_p9)
}
 0x651   : > { %s1685_s12 = scalar_lea.hbm %s2105_s22, 128  ;;  %s1689_s18 = scalar_lea.hbm %s2216_s6, 512 }
 0x652   : > { %p1686_p11 = scmp.ne.s32.totalorder %s2105_s22, %s1685_s12  ;;  %p1690_p2 = scmp.lt.u32.totalorder %s2105_s22, %s2216_s6 }
 0x653   : > { %p1691_p10 = scmp.lt.u32.totalorder %s1689_s18, %s1685_s12  ;;  %p1693_p4 = scmp.lt.u32.totalorder %s1685_s12, %s2105_s22 }
 0x654   : > { %p1687_p5 = pnand %p1686_p11, %p1946_p12 }
 0x655   : > { %p1692_p1 = por %p1691_p10, %p1690_p2 }
 0x656   : > { %p1688_p0 = pneg %p1687_p5 }
 0x657   : > { %p1694_p6 = por %p1693_p4, %p1692_p1 }
 0x659   : > { %p1695_p8 = pnand %p1694_p6, %p1688_p0 }
 0x65b   : > { %1698 = shalt.err (!%p1695_p8)
}
 0x65c   : > { %1536 = dma.vmem_to_hbm [thread:$0]  (%p1946_p12), %s2107_s17, 128, %s2105_s22, %s2110_s10  }
 0x65d   : > { %s2139_s12 = scalar_lea.hbm %s2215_s5, %s1375_s14  ;;  %s1111_s21 = scalar_lea.sflag [#allocation4], %s1995_s16 }
 0x65e   : > { %s1699_s11 = scalar_lea.vmem %s2098_s15, 256  ;;  %s1818_s18 = smov [#allocation7]  }
 0x65f   : > { %p1700_p13 = scmp.ne.s32.totalorder %s2098_s15, %s1699_s11  ;;  %s1703_s23 = sshll.u32 %s1818_s18, 4  ;;  %s1704_s23 = int_to_ptr.vmem [resolvable:$false] %s1703_s23 }
 0x660   : > { %s1705_s30 = scalar_lea.vmem %s1704_s23, 512  ;;  %p1706_p9 = scmp.lt.s32.totalorder %s2098_s15, %s1704_s23 }
 0x661   : > { %p1701_p3 = pnand %p1700_p13, %p1946_p12  ;;  %p1707_p11 = scmp.lt.s32.totalorder %s1705_s30, %s1699_s11 }
 0x663   : > { %p1702_p7 = pneg %p1701_p3  ;;  %p1708_p5 = por %p1707_p11, %p1706_p9 }
 0x665   : > { %p1709_p0 = pnand %p1708_p5, %p1702_p7 }
 0x667   : > { %1712 = shalt.err (!%p1709_p0)
}
 0x668   : > { %s1713_s22 = scalar_lea.hbm %s2139_s12, 256  ;;  %s1717_s9 = scalar_lea.hbm %s2215_s5, 1024 }
 0x669   : > { %p1714_p2 = scmp.ne.s32.totalorder %s2139_s12, %s1713_s22  ;;  %p1718_p4 = scmp.lt.u32.totalorder %s2139_s12, %s2215_s5 }
 0x66a   : > { %p1719_p6 = scmp.lt.u32.totalorder %s1717_s9, %s1713_s22  ;;  %p1721_p13 = scmp.lt.u32.totalorder %s1713_s22, %s2139_s12 }
 0x66b   : > { %p1715_p10 = pnand %p1714_p2, %p1946_p12 }
 0x66c   : > { %p1720_p8 = por %p1719_p6, %p1718_p4 }
 0x66d   : > { %p1716_p1 = pneg %p1715_p10 }
 0x66e   : > { %p1722_p3 = por %p1721_p13, %p1720_p8 }
 0x670   : > { %p1723_p7 = pnand %p1722_p3, %p1716_p1 }
 0x672   : > { %1726 = shalt.err (!%p1723_p7)
}
 0x673   : > { %s1819_s11 = smov 128   ;;  %s2234_s23 = smov 8   ;;  %v1035_v37 = vld [vmem:[#allocation2 + $0x198] sm:$0x1] }
 0x674   : > { %1535 = dma.vmem_to_hbm [thread:$0]  (%p1946_p12), %s2098_s15, 256, %s2139_s12, %s1111_s21, %s1819_s11, %s1819_s11, %s2234_s23  }
 0x675   : > { %s1370_s30 = sshll.u32 %s1882_s28, 4  ;;  %s366_s17 = scalar_lea.vmem [#allocation10], %s1995_s16 }
 0x676   : > { %s1162_s22 = sshll.u32 %s366_s17, 4  ;;  %s2171_s29 = scalar_lea.hbm %s2217_s7, %s1370_s30  ;;  %s1163_s22 = int_to_ptr.vmem [resolvable:$true] %s1162_s22 }
 0x677   : > { %s1727_s18 = scalar_lea.vmem %s1163_s22, 16  ;;  %s1820_s15 = smov [#allocation10]  }
 0x678   : > { %p1728_p9 = scmp.ne.s32.totalorder %s1163_s22, %s1727_s18  ;;  %s1731_s12 = sshll.u32 %s1820_s15, 4  ;;  %s1732_s12 = int_to_ptr.vmem [resolvable:$false] %s1731_s12 }
 0x679   : > { %s1733_s28 = scalar_lea.vmem %s1732_s12, 32  ;;  %p1734_p0 = scmp.lt.s32.totalorder %s1163_s22, %s1732_s12 }
 0x67a   : > { %p1729_p11 = pnand %p1728_p9, %p1946_p12  ;;  %p1735_p2 = scmp.lt.s32.totalorder %s1733_s28, %s1727_s18 }
 0x67c   : > { %p1730_p5 = pneg %p1729_p11  ;;  %p1736_p10 = por %p1735_p2, %p1734_p0 }
 0x67e   : > { %p1737_p1 = pnand %p1736_p10, %p1730_p5 }
 0x722   : > { %v1104_v21 = vpop.f32.mrb[2].mxu0 }
 0x723   : > { %v1105_v22 = vadd.f32 %v1104_v21, %v1035_v37  ;;  %v1106_v23 = vpop.f32.mrb[3].mxu0 }
 0x725   : > { %v1108_v24 = vmax.f32 %v1105_v22, 0.0 }
 0x727   : > { %1109 = vst [vmem:[%s366_s17] sm:$0x1] %v1108_v24 }
 0x728   : > { %1740 = shalt.err (!%p1737_p1)
}
 0x729   : > { %s1741_s16 = scalar_lea.hbm %s2171_s29, 16  ;;  %s1745_s23 = scalar_lea.hbm %s2217_s7, 64 }
 0x72a   : > { %p1742_p4 = scmp.ne.s32.totalorder %s2171_s29, %s1741_s16  ;;  %p1746_p13 = scmp.lt.u32.totalorder %s2171_s29, %s2217_s7 }
 0x72b   : > { %p1747_p3 = scmp.lt.u32.totalorder %s1745_s23, %s1741_s16  ;;  %p1749_p9 = scmp.lt.u32.totalorder %s1741_s16, %s2171_s29 }
 0x72c   : > { %p1743_p6 = pnand %p1742_p4, %p1946_p12 }
 0x72d   : > { %p1748_p7 = por %p1747_p3, %p1746_p13 }
 0x72e   : > { %p1744_p8 = pneg %p1743_p6 }
 0x72f   : > { %p1750_p11 = por %p1749_p9, %p1748_p7 }
 0x731   : > { %p1751_p5 = pnand %p1750_p11, %p1744_p8 }
 0x733   : > { %1754 = shalt.err (!%p1751_p5)
}
 0x734   : > { %1537 = dma.vmem_to_hbm [thread:$0]  (%p1946_p12), %s1163_s22, 16, %s2171_s29, %s2110_s10  }
 0x735 PF: > { %p1562_p0 = scmp.ge.s32.totalorder %s1801_s27, 2  ;;  %s1174_s14 = sand.u32 1, %s1789_s24  }
 0x736   : > { %p2235_p2 = scmp.ne.s32.totalorder %s2224_s8, 0  ;;  %s1175_s9 = scalar_lea.sflag [#allocation4], %s1174_s14 }
 0x738   : > { %p1550_p10 = pnand %p1562_p0, %p2235_p2 }
 0x73a   : > { %1780 = dma.done.wait (!%p1550_p10), %s1175_s9, 256  }
 0x73b   : > { %1782 = vsyncadd (!%p1550_p10), %s1175_s9, 4294967040  ;;  %s2236_s18 = sadd.s32 4294967294, %s1801_s27  }
 0x73c   : > { %s1183_s15 = sand.u32 1, %s2236_s18  }
 0x73d   : > { %s1184_s12 = scalar_lea.sflag [#allocation9], %s1183_s15 }
 0x73e   : > { %1784 = dma.done.wait (!%p1550_p10), %s1184_s12, 144  }
 0x73f   : > { %1786 = vsyncadd (!%p1550_p10), %s1184_s12, 4294967152  ;;  %p25_p12 = scmp.ge.s32.totalorder %s1916_s13, 6   ;;  %s2237_s24 = smov %s1793_s25 }
 0x740   : > { %s2238_s25 = smov %s1797_s26  ;;  %s2239_s26 = smov %s1942_s19 }
 0x741   : > { %s2240_s27 = smov %s1916_s13  ;;  %27 = sbr.rel (!%p25_p12) target bundleno = 8 (0x8), region = 131 }
 0x748   :  { %1197 = vsyncpa [#allocation3], 1 }
 0x749   :  { %1199 = vsyncpa [#allocation3 + $0x1], 1 }
 0x74a   :  { %1200 = vsyncpa [#allocation6], 1 }
 0x74b   :  { %1202 = vsyncpa [#allocation6 + $0x1], 1 }
 0x74c   :  { %1203 = vsyncpa [#allocation4], 1 }
 0x74d   :  { %1205 = vsyncpa [#allocation4 + $0x1], 1 }
 0x74e   :  { %1206 = vsyncpa [#allocation9], 1 }
 0x74f   :  { %1208 = vsyncpa [#allocation9 + $0x1], 1 }

</bundles_post_ra>
